<compile_context>
chip_gen: v6e
topology: v6e:2x2x1
jax: 0.10.0
libtpu: 0.0.40
codegen_flags: <defaults>
</compile_context>

<pallas_src>
import functools

import jax
import jax.numpy as jnp
import numpy as np
from jax.experimental import pallas as pl
from jax.experimental.pallas import tpu as pltpu


# ----------------------------------------------------------------------------
# Fused whole-network kernel
# ----------------------------------------------------------------------------
def _pick_batch_tile(n, max_tile=8):
    """Largest divisor of n (<= max_tile) that still leaves >= 2 grid steps when
    n >= 2, so the parallel batch axis can feed both v7x TensorCores."""
    best = 1
    for bt in range(1, min(n, max_tile) + 1):
        if n % bt == 0 and (n == 1 or n // bt >= 2):
            best = bt
    return best


def _make_tcn_kernel(meta, K, L, B_t, O):
    """meta: tuple of (dilation, C_in, C_out, has_down) per TemporalBlock."""

    def _pack_causal(v3, dilation, C):
        # v3: (B_t, L, C) f32 -> (B_t*L, K*C) f32.  The K dilation-shifted,
        # causally zero-padded copies are stacked along the contraction (lane)
        # axis, per sample, so one MXU matmul realizes the whole conv.
        taps = []
        for k in range(K):                       # static unroll over taps
            s = (K - 1 - k) * dilation           # causal left shift of tap k
            if s == 0:
                taps.append(v3)
            elif s >= L:                         # tap lies entirely in the pad
                taps.append(jnp.zeros_like(v3))
            else:
                taps.append(jnp.concatenate(
                    [jnp.zeros((B_t, s, C), v3.dtype), v3[:, :L - s, :]],
                    axis=1))
        return jnp.concatenate(taps, axis=-1).reshape(B_t * L, K * C)

    def kernel(*refs):
        it = iter(refs)
        x_ref = next(it)
        x3 = x_ref[...].astype(jnp.float32)                   # (B_t, L, C0)

        for (dilation, C_in, C_out, has_down) in meta:
            w1 = next(it); b1 = next(it); w2 = next(it); b2 = next(it)
            wd = next(it) if has_down else None
            bd = next(it) if has_down else None

            # conv1 (causal, dilated) -> ReLU   [dropout = identity in eval]
            a1 = _pack_causal(x3, dilation, C_in).astype(jnp.bfloat16)
            h = jnp.dot(a1, w1[...], preferred_element_type=jnp.float32)
            h = jnp.maximum(h + b1[...], 0.0)                  # (B_t*L, C_out)

            # conv2 -> ReLU (h never leaves VMEM)
            a2 = _pack_causal(h.reshape(B_t, L, C_out), dilation, C_out)
            out = jnp.dot(a2.astype(jnp.bfloat16), w2[...],
                          preferred_element_type=jnp.float32)
            out = jnp.maximum(out + b2[...], 0.0)

            # residual path (1x1 conv when channel counts differ) + final ReLU,
            # epilogue stays in f32.
            x2 = x3.reshape(B_t * L, C_in)
            if has_down:
                res = jnp.dot(x2.astype(jnp.bfloat16), wd[...],
                              preferred_element_type=jnp.float32) + bd[...]
            else:
                res = x2                                       # C_in == C_out
            y = jnp.maximum(out + res, 0.0)                    # (B_t*L, C_out)
            x3 = y.reshape(B_t, L, C_out)

        # final Linear on the last timestep only: the full last-layer
        # activation never touches HBM.
        w_fc = next(it); b_fc = next(it); o_ref = next(it)
        last = x3[:, L - 1, :]                                 # (B_t, C_last)
        fc = jnp.dot(last.astype(jnp.bfloat16), w_fc[...],
                     preferred_element_type=jnp.float32) + b_fc[...]
        o_ref[...] = fc.reshape(B_t, 1, O).astype(o_ref.dtype)

    return kernel


def temporal_conv_net_forward(x_ncl, params, *, batch_tile=None):
    """Full TCN forward in a single fused pallas_call.

    x_ncl : (N, C_in, L) f32 -- PyTorch NCL layout.
    Returns (N, output_size) f32.
    """
    x = jnp.transpose(x_ncl, (0, 2, 1)).astype(jnp.float32)   # (N, L, C0)
    N, L, C0 = x.shape
    blocks = params["blocks"]
    K = blocks[0]["w1"].shape[0]
    O = params["w_fc"].shape[1]
    B_t = _pick_batch_tile(N) if batch_tile is None else batch_tile
    assert N % B_t == 0

    def w_spec(shape):
        nd = len(shape)
        return pl.BlockSpec(shape, lambda n, _nd=nd: (0,) * _nd)

    args = [x]
    in_specs = [pl.BlockSpec((B_t, L, C0), lambda n: (n, 0, 0))]
    meta = []
    for i, blk in enumerate(blocks):
        Kb, C_in, C_out = blk["w1"].shape
        dilation = 2 ** i
        has_down = blk["wd"] is not None
        meta.append((dilation, C_in, C_out, has_down))
        w1 = blk["w1"].reshape(Kb * C_in, C_out).astype(jnp.bfloat16)
        b1 = blk["b1"].reshape(1, C_out).astype(jnp.float32)
        w2 = blk["w2"].reshape(Kb * C_out, C_out).astype(jnp.bfloat16)
        b2 = blk["b2"].reshape(1, C_out).astype(jnp.float32)
        args += [w1, b1, w2, b2]
        in_specs += [w_spec(w1.shape), w_spec(b1.shape),
                     w_spec(w2.shape), w_spec(b2.shape)]
        if has_down:
            wd = blk["wd"].reshape(C_in, C_out).astype(jnp.bfloat16)
            bd = blk["bd"].reshape(1, C_out).astype(jnp.float32)
            args += [wd, bd]
            in_specs += [w_spec(wd.shape), w_spec(bd.shape)]
    w_fc = params["w_fc"].astype(jnp.bfloat16)
    b_fc = params["b_fc"].reshape(1, O).astype(jnp.float32)
    args += [w_fc, b_fc]
    in_specs += [w_spec(w_fc.shape), w_spec(b_fc.shape)]

    kernel = _make_tcn_kernel(tuple(meta), K, L, B_t, O)
    out = pl.pallas_call(
        kernel,
        out_shape=jax.ShapeDtypeStruct((N, 1, O), jnp.float32),
        grid=(N // B_t,),
        in_specs=in_specs,
        out_specs=pl.BlockSpec((B_t, 1, O), lambda n: (n, 0, 0)),
        compiler_params=pltpu.CompilerParams(
            dimension_semantics=("parallel",)),
    )(*args)
    return out[:, 0, :]


# ----------------------------------------------------------------------------
# Pure-JAX reference (same bf16-operand / f32-accumulate math, no Pallas)
# ----------------------------------------------------------------------------
def _ref_dilated_conv_bf16(x, w, b, dilation):
    N, L, _ = x.shape
    K, _, C_out = w.shape
    pad = (K - 1) * dilation
    xp = jnp.pad(x, ((0, 0), (pad, 0), (0, 0))).astype(jnp.bfloat16)
    wb = w.astype(jnp.bfloat16)
    acc = jnp.zeros((N, L, C_out), jnp.float32)
    for k in range(K):
        acc = acc + jnp.einsum(
            "nlc,co->nlo", xp[:, k * dilation:k * dilation + L, :], wb[k],
            preferred_element_type=jnp.float32)
    return acc + b


def ref_forward(x_ncl, params):
    x = jnp.transpose(x_ncl, (0, 2, 1)).astype(jnp.float32)
    for i, blk in enumerate(params["blocks"]):
        d = 2 ** i
        h = jnp.maximum(_ref_dilated_conv_bf16(x, blk["w1"], blk["b1"], d), 0.0)
        out = jnp.maximum(_ref_dilated_conv_bf16(h, blk["w2"], blk["b2"], d), 0.0)
        if blk["wd"] is None:
            res = x
        else:
            res = jnp.einsum("nlc,co->nlo", x.astype(jnp.bfloat16),
                             blk["wd"][0].astype(jnp.bfloat16),
                             preferred_element_type=jnp.float32) + blk["bd"]
        x = jnp.maximum(out + res, 0.0)
    last = x[:, -1, :]
    fc = jnp.dot(last.astype(jnp.bfloat16), params["w_fc"].astype(jnp.bfloat16),
                 preferred_element_type=jnp.float32)
    return fc + params["b_fc"]


# ----------------------------------------------------------------------------
# Deterministic parameter init (shapes follow the PyTorch module __init__)
# ----------------------------------------------------------------------------
def init_params(key, input_size, output_size, num_channels, kernel_size):
    params = {"blocks": []}
    for i, out_ch in enumerate(num_channels):
        in_ch = input_size if i == 0 else num_channels[i - 1]
        key, k1, k2, k3, k4, k5, k6 = jax.random.split(key, 7)
        blk = {
            # stored as (K, C_in, C_out) -- transpose of PyTorch's (C_out, C_in, K)
            "w1": 0.1 * jax.random.normal(k1, (kernel_size, in_ch, out_ch), jnp.float32),
            "b1": 0.1 * jax.random.normal(k2, (out_ch,), jnp.float32),
            "w2": 0.1 * jax.random.normal(k3, (kernel_size, out_ch, out_ch), jnp.float32),
            "b2": 0.1 * jax.random.normal(k4, (out_ch,), jnp.float32),
            "wd": None,
            "bd": None,
        }
        if in_ch != out_ch:
            blk["wd"] = 0.1 * jax.random.normal(k5, (1, in_ch, out_ch), jnp.float32)
            blk["bd"] = 0.1 * jax.random.normal(k6, (out_ch,), jnp.float32)
        params["blocks"].append(blk)
    key, kw, kb = jax.random.split(key, 3)
    params["w_fc"] = 0.1 * jax.random.normal(kw, (num_channels[-1], output_size), jnp.float32)
    params["b_fc"] = 0.1 * jax.random.normal(kb, (output_size,), jnp.float32)
    return params


if __name__ == "__main__":
    # Small, module-consistent shapes.
    N, input_size, output_size, L = 2, 4, 5, 16
    num_channels = [8, 8]
    kernel_size = 3

    key = jax.random.PRNGKey(0)
    key, kx = jax.random.split(key)
    x = jax.random.normal(kx, (N, input_size, L), jnp.float32)  # PyTorch NCL layout
    params = init_params(key, input_size, output_size, num_channels, kernel_size)

    fwd = jax.jit(functools.partial(temporal_conv_net_forward, params=params))
    out = jax.block_until_ready(fwd(x))
    ref = jax.block_until_ready(ref_forward(x, params))

    assert out.shape == (N, output_size), out.shape
    np.testing.assert_allclose(np.asarray(out), np.asarray(ref), rtol=2e-3, atol=2e-3)
    print("KERNEL_OK")
</pallas_src>

<mosaic_0001>
module attributes {stable_mosaic.version = 11 : i64} {
  func.func @kernel(%arg0: i32, %arg1: memref<1x16x4xf32, #tpu.memory_space<vmem>>, %arg2: memref<12x8xbf16, #tpu.memory_space<vmem>>, %arg3: memref<1x8xf32, #tpu.memory_space<vmem>>, %arg4: memref<24x8xbf16, #tpu.memory_space<vmem>>, %arg5: memref<1x8xf32, #tpu.memory_space<vmem>>, %arg6: memref<4x8xbf16, #tpu.memory_space<vmem>>, %arg7: memref<1x8xf32, #tpu.memory_space<vmem>>, %arg8: memref<24x8xbf16, #tpu.memory_space<vmem>>, %arg9: memref<1x8xf32, #tpu.memory_space<vmem>>, %arg10: memref<24x8xbf16, #tpu.memory_space<vmem>>, %arg11: memref<1x8xf32, #tpu.memory_space<vmem>>, %arg12: memref<8x5xbf16, #tpu.memory_space<vmem>>, %arg13: memref<1x5xf32, #tpu.memory_space<vmem>>, %arg14: memref<1x1x5xf32, #tpu.memory_space<vmem>>) attributes {dimension_semantics = [#tpu.dimension_semantics<parallel>], iteration_bounds = array<i64: 2>, scalar_prefetch = 0 : i64, scratch_operands = 0 : i64, tpu.core_type = #tpu.core_type<tc>, window_params = [{transform_indices = @transform_0, window_bounds = array<i64: 1, 16, 4>}, {pipeline_mode = #tpu.pipeline_mode<synchronous>, transform_indices = @transform_1, window_bounds = array<i64: 12, 8>}, {pipeline_mode = #tpu.pipeline_mode<synchronous>, transform_indices = @transform_2, window_bounds = array<i64: 1, 8>}, {pipeline_mode = #tpu.pipeline_mode<synchronous>, transform_indices = @transform_3, window_bounds = array<i64: 24, 8>}, {pipeline_mode = #tpu.pipeline_mode<synchronous>, transform_indices = @transform_4, window_bounds = array<i64: 1, 8>}, {pipeline_mode = #tpu.pipeline_mode<synchronous>, transform_indices = @transform_5, window_bounds = array<i64: 4, 8>}, {pipeline_mode = #tpu.pipeline_mode<synchronous>, transform_indices = @transform_6, window_bounds = array<i64: 1, 8>}, {pipeline_mode = #tpu.pipeline_mode<synchronous>, transform_indices = @transform_7, window_bounds = array<i64: 24, 8>}, {pipeline_mode = #tpu.pipeline_mode<synchronous>, transform_indices = @transform_8, window_bounds = array<i64: 1, 8>}, {pipeline_mode = #tpu.pipeline_mode<synchronous>, transform_indices = @transform_9, window_bounds = array<i64: 24, 8>}, {pipeline_mode = #tpu.pipeline_mode<synchronous>, transform_indices = @transform_10, window_bounds = array<i64: 1, 8>}, {pipeline_mode = #tpu.pipeline_mode<synchronous>, transform_indices = @transform_11, window_bounds = array<i64: 8, 5>}, {pipeline_mode = #tpu.pipeline_mode<synchronous>, transform_indices = @transform_12, window_bounds = array<i64: 1, 5>}, {transform_indices = @transform_13, window_bounds = array<i64: 1, 1, 5>}]} {
    %c0 = arith.constant 0 : index
    %c0_0 = arith.constant 0 : index
    %c0_1 = arith.constant 0 : index
    %0 = vector.load %arg1[%c0, %c0_0, %c0_1] : memref<1x16x4xf32, #tpu.memory_space<vmem>>, vector<1x16x4xf32>
    %cst = arith.constant 0.000000e+00 : f32
    %1 = vector.broadcast %cst : f32 to vector<1x2x4xf32>
    %2 = vector.extract_strided_slice %0 {offsets = [0, 0, 0], sizes = [1, 14, 4], strides = [1, 1, 1]} : vector<1x16x4xf32> to vector<1x14x4xf32>
    %3 = tpu.concatenate %1, %2 in 1 : vector<1x2x4xf32>, vector<1x14x4xf32> -> vector<1x16x4xf32>
    %cst_2 = arith.constant 0.000000e+00 : f32
    %4 = vector.broadcast %cst_2 : f32 to vector<1x1x4xf32>
    %5 = vector.extract_strided_slice %0 {offsets = [0, 0, 0], sizes = [1, 15, 4], strides = [1, 1, 1]} : vector<1x16x4xf32> to vector<1x15x4xf32>
    %6 = tpu.concatenate %4, %5 in 1 : vector<1x1x4xf32>, vector<1x15x4xf32> -> vector<1x16x4xf32>
    %7 = tpu.concatenate %3, %6, %0 in 2 : vector<1x16x4xf32>, vector<1x16x4xf32>, vector<1x16x4xf32> -> vector<1x16x12xf32>
    %8 = vector.shape_cast %7 : vector<1x16x12xf32> to vector<16x12xf32>
    %9 = arith.truncf %8 : vector<16x12xf32> to vector<16x12xbf16>
    %c0_3 = arith.constant 0 : index
    %c0_4 = arith.constant 0 : index
    %10 = vector.load %arg2[%c0_3, %c0_4] : memref<12x8xbf16, #tpu.memory_space<vmem>>, vector<12x8xbf16>
    %cst_5 = arith.constant dense<0.000000e+00> : vector<16x8xf32>
    %11 = tpu.matmul %9, %10, %cst_5 {dimension_numbers = #tpu.dot_dimension_numbers<[1], [0], [0], [1], [0, 0, 1, 1], [], []>} : vector<16x12xbf16>, vector<12x8xbf16>, vector<16x8xf32> -> vector<16x8xf32>
    %c0_6 = arith.constant 0 : index
    %c0_7 = arith.constant 0 : index
    %12 = vector.load %arg3[%c0_6, %c0_7] : memref<1x8xf32, #tpu.memory_space<vmem>>, vector<1x8xf32>
    %13 = vector.broadcast %12 : vector<1x8xf32> to vector<16x8xf32>
    %14 = arith.addf %11, %13 : vector<16x8xf32>
    %cst_8 = arith.constant 0.000000e+00 : f32
    %15 = vector.broadcast %cst_8 : f32 to vector<16x8xf32>
    %16 = arith.maximumf %14, %15 : vector<16x8xf32>
    %17 = vector.shape_cast %16 : vector<16x8xf32> to vector<1x16x8xf32>
    %cst_9 = arith.constant 0.000000e+00 : f32
    %18 = vector.broadcast %cst_9 : f32 to vector<1x2x8xf32>
    %19 = vector.extract_strided_slice %17 {offsets = [0, 0, 0], sizes = [1, 14, 8], strides = [1, 1, 1]} : vector<1x16x8xf32> to vector<1x14x8xf32>
    %20 = tpu.concatenate %18, %19 in 1 : vector<1x2x8xf32>, vector<1x14x8xf32> -> vector<1x16x8xf32>
    %cst_10 = arith.constant 0.000000e+00 : f32
    %21 = vector.broadcast %cst_10 : f32 to vector<1x1x8xf32>
    %22 = vector.extract_strided_slice %17 {offsets = [0, 0, 0], sizes = [1, 15, 8], strides = [1, 1, 1]} : vector<1x16x8xf32> to vector<1x15x8xf32>
    %23 = tpu.concatenate %21, %22 in 1 : vector<1x1x8xf32>, vector<1x15x8xf32> -> vector<1x16x8xf32>
    %24 = tpu.concatenate %20, %23, %17 in 2 : vector<1x16x8xf32>, vector<1x16x8xf32>, vector<1x16x8xf32> -> vector<1x16x24xf32>
    %25 = vector.shape_cast %24 : vector<1x16x24xf32> to vector<16x24xf32>
    %26 = arith.truncf %25 : vector<16x24xf32> to vector<16x24xbf16>
    %c0_11 = arith.constant 0 : index
    %c0_12 = arith.constant 0 : index
    %27 = vector.load %arg4[%c0_11, %c0_12] : memref<24x8xbf16, #tpu.memory_space<vmem>>, vector<24x8xbf16>
    %cst_13 = arith.constant dense<0.000000e+00> : vector<16x8xf32>
    %28 = tpu.matmul %26, %27, %cst_13 {dimension_numbers = #tpu.dot_dimension_numbers<[1], [0], [0], [1], [0, 0, 1, 1], [], []>} : vector<16x24xbf16>, vector<24x8xbf16>, vector<16x8xf32> -> vector<16x8xf32>
    %c0_14 = arith.constant 0 : index
    %c0_15 = arith.constant 0 : index
    %29 = vector.load %arg5[%c0_14, %c0_15] : memref<1x8xf32, #tpu.memory_space<vmem>>, vector<1x8xf32>
    %30 = vector.broadcast %29 : vector<1x8xf32> to vector<16x8xf32>
    %31 = arith.addf %28, %30 : vector<16x8xf32>
    %cst_16 = arith.constant 0.000000e+00 : f32
    %32 = vector.broadcast %cst_16 : f32 to vector<16x8xf32>
    %33 = arith.maximumf %31, %32 : vector<16x8xf32>
    %34 = vector.shape_cast %0 : vector<1x16x4xf32> to vector<16x4xf32>
    %35 = arith.truncf %34 : vector<16x4xf32> to vector<16x4xbf16>
    %c0_17 = arith.constant 0 : index
    %c0_18 = arith.constant 0 : index
    %36 = vector.load %arg6[%c0_17, %c0_18] : memref<4x8xbf16, #tpu.memory_space<vmem>>, vector<4x8xbf16>
    %cst_19 = arith.constant dense<0.000000e+00> : vector<16x8xf32>
    %37 = tpu.matmul %35, %36, %cst_19 {dimension_numbers = #tpu.dot_dimension_numbers<[1], [0], [0], [1], [0, 0, 1, 1], [], []>} : vector<16x4xbf16>, vector<4x8xbf16>, vector<16x8xf32> -> vector<16x8xf32>
    %c0_20 = arith.constant 0 : index
    %c0_21 = arith.constant 0 : index
    %38 = vector.load %arg7[%c0_20, %c0_21] : memref<1x8xf32, #tpu.memory_space<vmem>>, vector<1x8xf32>
    %39 = vector.broadcast %38 : vector<1x8xf32> to vector<16x8xf32>
    %40 = arith.addf %37, %39 : vector<16x8xf32>
    %41 = arith.addf %33, %40 : vector<16x8xf32>
    %cst_22 = arith.constant 0.000000e+00 : f32
    %42 = vector.broadcast %cst_22 : f32 to vector<16x8xf32>
    %43 = arith.maximumf %41, %42 : vector<16x8xf32>
    %44 = vector.shape_cast %43 : vector<16x8xf32> to vector<1x16x8xf32>
    %cst_23 = arith.constant 0.000000e+00 : f32
    %45 = vector.broadcast %cst_23 : f32 to vector<1x4x8xf32>
    %46 = vector.extract_strided_slice %44 {offsets = [0, 0, 0], sizes = [1, 12, 8], strides = [1, 1, 1]} : vector<1x16x8xf32> to vector<1x12x8xf32>
    %47 = tpu.concatenate %45, %46 in 1 : vector<1x4x8xf32>, vector<1x12x8xf32> -> vector<1x16x8xf32>
    %cst_24 = arith.constant 0.000000e+00 : f32
    %48 = vector.broadcast %cst_24 : f32 to vector<1x2x8xf32>
    %49 = vector.extract_strided_slice %44 {offsets = [0, 0, 0], sizes = [1, 14, 8], strides = [1, 1, 1]} : vector<1x16x8xf32> to vector<1x14x8xf32>
    %50 = tpu.concatenate %48, %49 in 1 : vector<1x2x8xf32>, vector<1x14x8xf32> -> vector<1x16x8xf32>
    %51 = tpu.concatenate %47, %50, %44 in 2 : vector<1x16x8xf32>, vector<1x16x8xf32>, vector<1x16x8xf32> -> vector<1x16x24xf32>
    %52 = vector.shape_cast %51 : vector<1x16x24xf32> to vector<16x24xf32>
    %53 = arith.truncf %52 : vector<16x24xf32> to vector<16x24xbf16>
    %c0_25 = arith.constant 0 : index
    %c0_26 = arith.constant 0 : index
    %54 = vector.load %arg8[%c0_25, %c0_26] : memref<24x8xbf16, #tpu.memory_space<vmem>>, vector<24x8xbf16>
    %cst_27 = arith.constant dense<0.000000e+00> : vector<16x8xf32>
    %55 = tpu.matmul %53, %54, %cst_27 {dimension_numbers = #tpu.dot_dimension_numbers<[1], [0], [0], [1], [0, 0, 1, 1], [], []>} : vector<16x24xbf16>, vector<24x8xbf16>, vector<16x8xf32> -> vector<16x8xf32>
    %c0_28 = arith.constant 0 : index
    %c0_29 = arith.constant 0 : index
    %56 = vector.load %arg9[%c0_28, %c0_29] : memref<1x8xf32, #tpu.memory_space<vmem>>, vector<1x8xf32>
    %57 = vector.broadcast %56 : vector<1x8xf32> to vector<16x8xf32>
    %58 = arith.addf %55, %57 : vector<16x8xf32>
    %cst_30 = arith.constant 0.000000e+00 : f32
    %59 = vector.broadcast %cst_30 : f32 to vector<16x8xf32>
    %60 = arith.maximumf %58, %59 : vector<16x8xf32>
    %61 = vector.shape_cast %60 : vector<16x8xf32> to vector<1x16x8xf32>
    %cst_31 = arith.constant 0.000000e+00 : f32
    %62 = vector.broadcast %cst_31 : f32 to vector<1x4x8xf32>
    %63 = vector.extract_strided_slice %61 {offsets = [0, 0, 0], sizes = [1, 12, 8], strides = [1, 1, 1]} : vector<1x16x8xf32> to vector<1x12x8xf32>
    %64 = tpu.concatenate %62, %63 in 1 : vector<1x4x8xf32>, vector<1x12x8xf32> -> vector<1x16x8xf32>
    %cst_32 = arith.constant 0.000000e+00 : f32
    %65 = vector.broadcast %cst_32 : f32 to vector<1x2x8xf32>
    %66 = vector.extract_strided_slice %61 {offsets = [0, 0, 0], sizes = [1, 14, 8], strides = [1, 1, 1]} : vector<1x16x8xf32> to vector<1x14x8xf32>
    %67 = tpu.concatenate %65, %66 in 1 : vector<1x2x8xf32>, vector<1x14x8xf32> -> vector<1x16x8xf32>
    %68 = tpu.concatenate %64, %67, %61 in 2 : vector<1x16x8xf32>, vector<1x16x8xf32>, vector<1x16x8xf32> -> vector<1x16x24xf32>
    %69 = vector.shape_cast %68 : vector<1x16x24xf32> to vector<16x24xf32>
    %70 = arith.truncf %69 : vector<16x24xf32> to vector<16x24xbf16>
    %c0_33 = arith.constant 0 : index
    %c0_34 = arith.constant 0 : index
    %71 = vector.load %arg10[%c0_33, %c0_34] : memref<24x8xbf16, #tpu.memory_space<vmem>>, vector<24x8xbf16>
    %cst_35 = arith.constant dense<0.000000e+00> : vector<16x8xf32>
    %72 = tpu.matmul %70, %71, %cst_35 {dimension_numbers = #tpu.dot_dimension_numbers<[1], [0], [0], [1], [0, 0, 1, 1], [], []>} : vector<16x24xbf16>, vector<24x8xbf16>, vector<16x8xf32> -> vector<16x8xf32>
    %c0_36 = arith.constant 0 : index
    %c0_37 = arith.constant 0 : index
    %73 = vector.load %arg11[%c0_36, %c0_37] : memref<1x8xf32, #tpu.memory_space<vmem>>, vector<1x8xf32>
    %74 = vector.broadcast %73 : vector<1x8xf32> to vector<16x8xf32>
    %75 = arith.addf %72, %74 : vector<16x8xf32>
    %cst_38 = arith.constant 0.000000e+00 : f32
    %76 = vector.broadcast %cst_38 : f32 to vector<16x8xf32>
    %77 = arith.maximumf %75, %76 : vector<16x8xf32>
    %78 = vector.shape_cast %44 : vector<1x16x8xf32> to vector<16x8xf32>
    %79 = arith.addf %77, %78 : vector<16x8xf32>
    %cst_39 = arith.constant 0.000000e+00 : f32
    %80 = vector.broadcast %cst_39 : f32 to vector<16x8xf32>
    %81 = arith.maximumf %79, %80 : vector<16x8xf32>
    %82 = vector.shape_cast %81 : vector<16x8xf32> to vector<1x16x8xf32>
    %83 = vector.extract_strided_slice %82 {offsets = [0, 15, 0], sizes = [1, 1, 8], strides = [1, 1, 1]} : vector<1x16x8xf32> to vector<1x1x8xf32>
    %84 = vector.shape_cast %83 : vector<1x1x8xf32> to vector<1x8xf32>
    %85 = arith.truncf %84 : vector<1x8xf32> to vector<1x8xbf16>
    %c0_40 = arith.constant 0 : index
    %c0_41 = arith.constant 0 : index
    %86 = vector.load %arg12[%c0_40, %c0_41] : memref<8x5xbf16, #tpu.memory_space<vmem>>, vector<8x5xbf16>
    %cst_42 = arith.constant dense<0.000000e+00> : vector<1x5xf32>
    %87 = tpu.matmul %85, %86, %cst_42 {dimension_numbers = #tpu.dot_dimension_numbers<[1], [0], [0], [1], [0, 0, 1, 1], [], []>} : vector<1x8xbf16>, vector<8x5xbf16>, vector<1x5xf32> -> vector<1x5xf32>
    %c0_43 = arith.constant 0 : index
    %c0_44 = arith.constant 0 : index
    %88 = vector.load %arg13[%c0_43, %c0_44] : memref<1x5xf32, #tpu.memory_space<vmem>>, vector<1x5xf32>
    %89 = arith.addf %87, %88 : vector<1x5xf32>
    %90 = vector.shape_cast %89 : vector<1x5xf32> to vector<1x1x5xf32>
    %c0_45 = arith.constant 0 : index
    %c0_46 = arith.constant 0 : index
    %c0_47 = arith.constant 0 : index
    %91 = vector.load %arg14[%c0_45, %c0_46, %c0_47] : memref<1x1x5xf32, #tpu.memory_space<vmem>>, vector<1x1x5xf32>
    tpu.vector_store %arg14[%c0_45, %c0_46, %c0_47], %90 {strides = array<i32>} : memref<1x1x5xf32, #tpu.memory_space<vmem>>, vector<1x1x5xf32>,
    return
  }
  func.func @transform_0(%arg0: i32) -> (i32, i32, i32) {
    %c0_i32 = arith.constant 0 : i32
    %c0_i32_0 = arith.constant 0 : i32
    %c0_i32_1 = arith.constant 0 : i32
    return %arg0, %c0_i32, %c0_i32_0 : i32, i32, i32
  }
  func.func @transform_1(%arg0: i32) -> (i32, i32) {
    %c0_i32 = arith.constant 0 : i32
    %c0_i32_0 = arith.constant 0 : i32
    %c0_i32_1 = arith.constant 0 : i32
    return %c0_i32, %c0_i32_0 : i32, i32
  }
  func.func @transform_2(%arg0: i32) -> (i32, i32) {
    %c0_i32 = arith.constant 0 : i32
    %c0_i32_0 = arith.constant 0 : i32
    %c0_i32_1 = arith.constant 0 : i32
    return %c0_i32, %c0_i32_0 : i32, i32
  }
  func.func @transform_3(%arg0: i32) -> (i32, i32) {
    %c0_i32 = arith.constant 0 : i32
    %c0_i32_0 = arith.constant 0 : i32
    %c0_i32_1 = arith.constant 0 : i32
    return %c0_i32, %c0_i32_0 : i32, i32
  }
  func.func @transform_4(%arg0: i32) -> (i32, i32) {
    %c0_i32 = arith.constant 0 : i32
    %c0_i32_0 = arith.constant 0 : i32
    %c0_i32_1 = arith.constant 0 : i32
    return %c0_i32, %c0_i32_0 : i32, i32
  }
  func.func @transform_5(%arg0: i32) -> (i32, i32) {
    %c0_i32 = arith.constant 0 : i32
    %c0_i32_0 = arith.constant 0 : i32
    %c0_i32_1 = arith.constant 0 : i32
    return %c0_i32, %c0_i32_0 : i32, i32
  }
  func.func @transform_6(%arg0: i32) -> (i32, i32) {
    %c0_i32 = arith.constant 0 : i32
    %c0_i32_0 = arith.constant 0 : i32
    %c0_i32_1 = arith.constant 0 : i32
    return %c0_i32, %c0_i32_0 : i32, i32
  }
  func.func @transform_7(%arg0: i32) -> (i32, i32) {
    %c0_i32 = arith.constant 0 : i32
    %c0_i32_0 = arith.constant 0 : i32
    %c0_i32_1 = arith.constant 0 : i32
    return %c0_i32, %c0_i32_0 : i32, i32
  }
  func.func @transform_8(%arg0: i32) -> (i32, i32) {
    %c0_i32 = arith.constant 0 : i32
    %c0_i32_0 = arith.constant 0 : i32
    %c0_i32_1 = arith.constant 0 : i32
    return %c0_i32, %c0_i32_0 : i32, i32
  }
  func.func @transform_9(%arg0: i32) -> (i32, i32) {
    %c0_i32 = arith.constant 0 : i32
    %c0_i32_0 = arith.constant 0 : i32
    %c0_i32_1 = arith.constant 0 : i32
    return %c0_i32, %c0_i32_0 : i32, i32
  }
  func.func @transform_10(%arg0: i32) -> (i32, i32) {
    %c0_i32 = arith.constant 0 : i32
    %c0_i32_0 = arith.constant 0 : i32
    %c0_i32_1 = arith.constant 0 : i32
    return %c0_i32, %c0_i32_0 : i32, i32
  }
  func.func @transform_11(%arg0: i32) -> (i32, i32) {
    %c0_i32 = arith.constant 0 : i32
    %c0_i32_0 = arith.constant 0 : i32
    %c0_i32_1 = arith.constant 0 : i32
    return %c0_i32, %c0_i32_0 : i32, i32
  }
  func.func @transform_12(%arg0: i32) -> (i32, i32) {
    %c0_i32 = arith.constant 0 : i32
    %c0_i32_0 = arith.constant 0 : i32
    %c0_i32_1 = arith.constant 0 : i32
    return %c0_i32, %c0_i32_0 : i32, i32
  }
  func.func @transform_13(%arg0: i32) -> (i32, i32, i32) {
    %c0_i32 = arith.constant 0 : i32
    %c0_i32_0 = arith.constant 0 : i32
    %c0_i32_1 = arith.constant 0 : i32
    return %arg0, %c0_i32, %c0_i32_0 : i32, i32, i32
  }
}

</mosaic_0001>

<bundles_post_ra>
// kernel: temporal_conv_net_forward.1
= control target key start
LH: loop header
LB: loop body
LE: loop exit
PB: predicated region body
PF: predicated region fallthrough
CT: control target
= control target key end

     0   :  { %18 = vsyncpa [#allocation3], 0  ;;  %s1801_s0 = inlined_call_operand.vmem [shape: f32[2,16,4], index: 0, kind: input, shape index: {}]   ;;  %s1802_s1 = inlined_call_operand.vmem [shape: bf16[12,8], index: 1, kind: input, shape index: {}]   ;;  %s1803_s2 = inlined_call_operand.vmem [shape: f32[1,8], index: 2, kind: input, shape index: {}]   ;;  %s1804_s3 = inlined_call_operand.vmem [shape: bf16[24,8], index: 3, kind: input, shape index: {}]   ;;  %s1805_s4 = inlined_call_operand.vmem [shape: f32[1,8], index: 4, kind: input, shape index: {}]   ;;  %s1806_s5 = inlined_call_operand.vmem [shape: bf16[4,8], index: 5, kind: input, shape index: {}]   ;;  %s1807_s6 = inlined_call_operand.vmem [shape: f32[1,8], index: 6, kind: input, shape index: {}]   ;;  %s1808_s7 = inlined_call_operand.vmem [shape: bf16[24,8], index: 7, kind: input, shape index: {}]   ;;  %s1809_s8 = inlined_call_operand.vmem [shape: f32[1,8], index: 8, kind: input, shape index: {}]   ;;  %s1810_s9 = inlined_call_operand.vmem [shape: bf16[24,8], index: 9, kind: input, shape index: {}]   ;;  %s1811_s10 = inlined_call_operand.hbm [shape: f32[1,8], index: 10, kind: input, shape index: {}]   ;;  %s1812_s11 = inlined_call_operand.hbm [shape: bf16[8,5], index: 11, kind: input, shape index: {}]   ;;  %s1813_s12 = inlined_call_operand.hbm [shape: f32[1,5], index: 12, kind: input, shape index: {}]   ;;  %s1814_s13 = inlined_call_operand.hbm [shape: f32[2,1,5], index: 13, kind: output, shape index: {}]  }
   0x1   :  { %19 = vsyncpa [#allocation6], 0 }
   0x2   :  { %20 = vsyncpa [#allocation4], 0 }
   0x3   :  { %22 = vsyncpa [#allocation4 + $0x1], 0  ;;  %s1533_s25 = smov 0   ;;  %s1535_s26 = smov 0  }
   0x4   :  { %s1537_s27 = smov 0   ;;  %s1539_s28 = smov 0  }
   0x5 LB: > { %1820 = sst [smem:[#allocation12_spill]] %s1448_s27  ;;  %s1554_s29 = sadd.s32 4294967295, %s1452_s28   ;;  %s1452_s28 = sphi %s1539_s28, %s1833_s28   ;;  %s1448_s27 = sphi %s1537_s27, %s1835_s27   ;;  %s1444_s26 = sphi %s1535_s26, %s1837_s26   ;;  %s1440_s25 = sphi %s1533_s25, %s1836_s25  }
   0x6   : > { %s1093_s30 = sadd.s32 4294967294, %s1452_s28   ;;  %s1558_s14 = sadd.s32 1, %s1452_s28  }
   0x7   : > { %1821 = sst [smem:[#allocation13_spill]] %s1558_s14  ;;  %s313_s15 = sadd.s32 1, %s1448_s27 }
   0x8   : > { %s310_s16 = ssub.s32 %s1452_s28, %s1558_s14  ;;  %p323_p0 = scmp.ne.s32.totalorder %s1448_s27, %s1444_s26 }
   0x9   : > { %p311_p1 = scmp.eq.s32.totalorder %s310_s16, 0  ;;  %p324_p2 = scmp.eq.s32.totalorder %s1554_s29, 1 }
   0xa   : > { %p329_p3 = scmp.ne.s32.totalorder %s1444_s26, %s1440_s25  ;;  %p330_p4 = scmp.eq.s32.totalorder %s1093_s30, 1 }
   0xb   : > { %s1569_s17 = scalar_select %p311_p1, %s1448_s27, %s313_s15  }
   0xc   : > { %p1571_p5 = por %p324_p2, %p323_p0  ;;  %p1575_p6 = por %p330_p4, %p329_p3 }
   0xd   : > { %1822 = sst [smem:[#allocation14_spill]] %s1569_s17  ;;  %p1094_p7 = scmp.ge.s32.totalorder %s1452_s28, 1 }
   0xe   : > { %s1823_s18 = scalar_select %p1571_p5, 1, 0 }
   0xf   : > { %s1824_s19 = scalar_select %p1575_p6, 1, 0 }
  0x10   : > { %p337_p8 = scmp.lt.s32.totalorder %s1452_s28, 3  ;;  %p1815_p9 = scmp.eq.s32.totalorder %s1554_s29, 0 }
  0x11   : > { %s1454_s21 = smov [#allocation5]   ;;  %s1455_s23 = smov [#allocation2]  }
  0x12   : > { %p1582_p10 = pnand %p1094_p7, %p337_p8  ;;  %s388_s22 = sshll.u32 %s1454_s21, 4  ;;  %s389_s22 = int_to_ptr.vmem [resolvable:$true] %s388_s22 }
  0x13   : > { %s377_s24 = sshll.u32 %s1455_s23, 4  ;;  %s1456_s15 = smov [#allocation7]   ;;  %s378_s24 = int_to_ptr.vmem [resolvable:$true] %s377_s24 }
  0x14   : > { %p1198_p11 = pneg %p1582_p10  ;;  %s399_s16 = sshll.u32 %s1456_s15, 4  ;;  %s1594_s16 = int_to_ptr.vmem [resolvable:$true] %s399_s16 }
  0x15   : > { %s1317_s21 = scalar_lea.vmem %s389_s22, 64  ;;  %p1325_p3 = scmp.lt.s32.totalorder %s389_s22, %s389_s22 }
  0x16   : > { %p1590_p12 = pnand %p1815_p9, %p1198_p11  ;;  %p1318_p0 = scmp.ne.s32.totalorder %s389_s22, %s1317_s21 }
  0x17   : > { %p1326_p4 = scmp.lt.s32.totalorder %s1317_s21, %s1317_s21 }
  0x18   : > { %p1308_p13 = pneg %p1590_p12 }
  0x19   : > { %p1327_p7 = por %p1326_p4, %p1325_p3 }
  0x1a   : > { %p1320_p1 = pnand %p1318_p0, %p1308_p13 }
  0x1c   : > { %p1321_p2 = pneg %p1320_p1 }
  0x1e   : > { %p1328_p8 = pnand %p1327_p7, %p1321_p2 }
  0x20   : > { %1331 = shalt.err (!%p1328_p8)
}
  0x21   : > { %1204 = dma.hbm_to_vmem [thread:$0]  (!%p1590_p12), %s1812_s11, 64, %s389_s22, [#allocation6]  }
  0x22   : > { %s1343_s15 = scalar_lea.vmem %s378_s24, 16  ;;  %s1350_s27 = scalar_lea.vmem %s378_s24, 32 }
  0x23   : > { %p1344_p11 = scmp.ne.s32.totalorder %s378_s24, %s1343_s15  ;;  %p1351_p0 = scmp.lt.s32.totalorder %s378_s24, %s378_s24 }
  0x24   : > { %p1352_p1 = scmp.lt.s32.totalorder %s1350_s27, %s1343_s15 }
  0x25   : > { %p1346_p9 = pnand %p1344_p11, %p1308_p13 }
  0x26   : > { %p1353_p5 = por %p1352_p1, %p1351_p0 }
  0x27   : > { %p1347_p6 = pneg %p1346_p9 }
  0x29   : > { %p1354_p3 = pnand %p1353_p5, %p1347_p6 }
  0x2b   : > { %1357 = shalt.err (!%p1354_p3)
}
  0x2c   : > { %1201 = dma.hbm_to_vmem [thread:$0]  (!%p1590_p12), %s1811_s10, 16, %s378_s24, [#allocation3]  }
  0x2d   : > { %s1369_s17 = scalar_lea.vmem %s1594_s16, 16  ;;  %s1376_s27 = scalar_lea.vmem %s1594_s16, 32 }
  0x2e   : > { %p1370_p2 = scmp.ne.s32.totalorder %s1594_s16, %s1369_s17  ;;  %p1377_p5 = scmp.lt.s32.totalorder %s1594_s16, %s1594_s16 }
  0x2f   : > { %p1378_p6 = scmp.lt.s32.totalorder %s1376_s27, %s1369_s17 }
  0x30   : > { %p1372_p9 = pnand %p1370_p2, %p1308_p13 }
  0x31   : > { %p1379_p7 = por %p1378_p6, %p1377_p5 }
  0x32   : > { %p1373_p4 = pneg %p1372_p9 }
  0x34   : > { %p1380_p8 = pnand %p1379_p7, %p1373_p4 }
  0x36   : > { %1383 = shalt.err (!%p1380_p8)
}
  0x37   : > { %1207 = dma.hbm_to_vmem [thread:$0]  (!%p1590_p12), %s1813_s12, 16, %s1594_s16, [#allocation6]  }
  0x38   : > { %420 = sbr.rel (%p1582_p10) target bundleno = 1610 (0x64a), region = 72  ;;  %p1827_p13 = scmp.eq.s32.totalorder (!%p1582_p10), %s1554_s29, 0 }
  0x3d   : > { %1427 = dma.done.wait (%p1827_p13), [#allocation3], 16   ;;  %p1828_p11 = pmov %p1827_p13 }
  0x3f   : > { %1429 = vsyncadd (%p1828_p11), [#allocation3], 4294967280  ;;  %p1829_p0 = pmov %p1828_p11 }
  0x41   : > { %1431 = dma.done.wait (%p1829_p0), [#allocation6], 80   ;;  %p1830_p1 = pmov %p1829_p0 }
  0x42   : > { %p471_p3 = scmp.lt.s32.totalorder %s1554_s29, 1  ;;  %v1457_v0 = vmov 0.0   ;;  %vm488_vm0 = vcmask 1040384   ;;  %vm532_vm1 = vcmask 1045504   ;;  %vm1458_vm2 = vmmov 0   ;;  %s1459_s17 = smov 4  }
  0x43   : > { %1433 = vsyncadd (%p1830_p1), [#allocation6], 4294967216  ;;  %1142 = vmatprep.subr.bf16.mxu0 %v1457_v0  ;;  %1148 = vmatprep.subr.bf16.mxu1 %v1457_v0  ;;  %v1299_v5 = vld [vmem:[%s1802_s1] sm:$0x3f]   ;;  %s1460_s27 = smov 8   ;;  %vm481_vm3 = vcmask 1041408  }
  0x44   : > { %s472_s24 = scalar_select %p471_p3, %s1554_s29, 1  ;;  %1144 = vmatprep.mubr.msk.bf16.mxu0 %vm1458_vm2, %v1457_v0  ;;  %1152 = vmatprep.mubr.msk.bf16.mxu1 %vm1458_vm2, %v1457_v0  ;;  %v534_v9 = vsel %vm532_vm1, %v1299_v5, 0  ;;  %vm507_vm4 = vcmask 31744   ;;  %vm510_vm5 = vcmask 64512   ;;  %vm528_vm6 = vcmask 97280   ;;  %v1301_v38 = vld [vmem:[%s1804_s3] sm:$0xff]  }
  0x45   : > { %1143 = vmatpush3.bf16.msra.mxu0 %v534_v9  ;;  %v1105_v26 = vld [vmem:[%s1803_s2] ss:$0 sm:$0xff]  ;;  %v1300_v28 = vld [vmem:[%s1804_s3 + $0x8] ss:$0 sps:$4 sm:$0xff]   ;;  %vm634_vm7 = vcmask 1043456   ;;  %s1461_s21 = smov 16  }
  0x46   : > { %s1126_s30 = sshll.u32 %s472_s24, 4  ;;  %1156 = vmatprep.subr.bf16.mxu0 %v1457_v0  ;;  %v682_v30 = vld [vmem:[%s1806_s5] sm:$0x3]  ;;  %v636_v32 = vsel %vm634_vm7, %v1300_v28, 0  ;;  %vm607_vm8 = vcmask 130048   ;;  %vm630_vm9 = vcmask 195584  }
  0x47   : > { %s475_s23 = scalar_lea.vmem %s1801_s0, %s1126_s30  ;;  %v694_v33 = vsel %vm481_vm3, %v682_v30, 0  ;;  %1149 = vmatpush3.bf16.msra.mxu1 %v636_v32  ;;  %vm992_vm10 = vcmask 32768   ;;  %p1831_p12 = scmp.ne.s32.totalorder %s1823_s18, 0 }
  0x48   : > { %v477_v1 = vld [vmem:[%s475_s23] sm:$0xff]  ;;  %v478_v2 = vld [vmem:[%s475_s23 + $0x8] sm:$0xff]  ;;  %1150 = vmatprep.subr.bf16.mxu1 %v1457_v0  ;;  %s1462_s22 = smov [#allocation8]  }
  0x49   : > { %v489_v3 = vrot.slane %v477_v1, 7  ;;  %v490_v4 = vrot.slane %v478_v2, 7  ;;  %v1264_v10 = vpack.i.bf16 %v478_v2, %v477_v1  ;;  %v483_v11 = vrot.slane %v478_v2, 6  ;;  %s1388_s24 = sshll.u32 %s1462_s22, 4  ;;  %s1389_s24 = int_to_ptr.vmem [resolvable:$false] %s1388_s24 }
  0x4a   : > { %v482_v12 = vrot.slane %v477_v1, 6  ;;  %v681_v36 = vpack.c.bf16 %v478_v2, %v477_v1  ;;  %s1390_s30 = scalar_lea.vmem %s1389_s24, 32 }
  0x4b   : > { %v491_v6 = vsel %vm488_vm0, %v489_v3, %v490_v4  ;;  %v493_v7 = vsel %vm488_vm0, 0.0, %v489_v3  ;;  %1151 = vmatpush3.bf16.msra.mxu1 %v1301_v38  ;;  %v1112_v3 = vld [vmem:[%s1807_s6] ss:$0 sm:$0xff] }
  0x4c   : > { %v1259_v8 = vpack.i.bf16 %v491_v6, %v493_v7  ;;  %v484_v16 = vsel %vm481_vm3, %v482_v12, %v483_v11  ;;  %v487_v17 = vsel %vm481_vm3, 0.0, %v482_v12  ;;  %1162 = vmatprep.subr.bf16.mxu1 %v1457_v0  ;;  %v1108_v4 = vld [vmem:[%s1805_s4] ss:$0 sm:$0xff] }
  0x4e   : > { %1260 = vrot.lane.b32.xlu0 %v1259_v8, %s1459_s17  ;;  %v1302_v8 = vld [vmem:[%s1808_s7 + $0x8] ss:$0 sps:$4 sm:$0xff]  }
  0x4f   : > { %v795_v11 = vsel %vm634_vm7, %v1302_v8, 0 }
  0x52   : > { %1265 = vrot.lane.b32.xlu0 %v1264_v10, %s1460_s27 }
  0xc0   : > { %v1261_v13 = vpop.permute.xlu0 %1260 }
  0xc1   : > { %v1263_v14 = vunpack.i.h.bf16 %v1261_v13  ;;  %v1262_v15 = vunpack.i.l.bf16 %v1261_v13 }
  0xc3   : > { %v508_v21 = vsel %vm507_vm4, %v487_v17, %v1262_v15  ;;  %v509_v22 = vsel %vm507_vm4, %v484_v16, %v1263_v14  ;;  %v1303_v16 = vld [vmem:[%s1808_s7] sm:$0xff]  }
  0xc4   : > { %v1266_v18 = vpop.permute.xlu0 %1265 }
  0xc5   : > { %v1268_v19 = vunpack.i.h.bf16 %v1266_v18  ;;  %v1267_v20 = vunpack.i.l.bf16 %v1266_v18 }
  0xc7   : > { %v511_v23 = vsel %vm510_vm5, %v508_v21, %v1267_v20  ;;  %v512_v24 = vsel %vm510_vm5, %v509_v22, %v1268_v19 }
  0xc8   : > { %v513_v25 = vpack.c.bf16 %v512_v24, %v511_v23 }
  0xca   : > { %1145 = vmatmul.mubr.msk.bf16.vlgmr.msra.gmra.mxu0 %vm528_vm6, %v513_v25 }
  0xcb   : > { %1158 = vmatprep.mubr.msk.bf16.mxu0 %vm1458_vm2, %v1457_v0  ;;  %1157 = vmatpush3.bf16.msra.mxu0 %v694_v33 }
  0xcc   : > { %1170 = vmatprep.subr.bf16.mxu0 %v1457_v0 }
  0xd2   : > { %1159 = vmatmul.mubr.msk.bf16.vlgmr.msra.gmra.mxu0 %vm507_vm4, %v681_v36 }
  0xd3   : > { %1174 = vmatprep.mubr.msk.bf16.mxu0 %vm1458_vm2, %v1457_v0 }
 0x18a   : > { %v570_v27 = vpop.f32.mrf.mxu0 }
 0x18b   : > { %v571_v29 = vadd.f32 %v1105_v26, %v570_v27 }
 0x18c   : > { %v1146_v31 = vpop.f32.mrf.mxu0 }
 0x18d   : > { %v577_v34 = vmax.f32 %v571_v29, 0.0 }
 0x18e   : > { %v573_v35 = vpop.f32.mrf.mxu0 }
 0x18f   : > { %v574_v37 = vadd.f32 %v1105_v26, %v573_v35  ;;  %v587_v41 = vrot.slane %v577_v34, 7  ;;  %v581_v42 = vrot.slane %v577_v34, 6 }
 0x190   : > { %v1147_v39 = vpop.f32.mrf.mxu0 }
 0x191   : > { %v578_v40 = vmax.f32 %v574_v37, 0.0  ;;  %v591_v46 = vsel %vm488_vm0, 0.0, %v587_v41  ;;  %v586_v54 = vsel %vm481_vm3, 0.0, %v581_v42 }
 0x192   : > { %v730_v62 = vpop.f32.mrf.mxu0 }
 0x193   : > { %v582_v43 = vrot.slane %v578_v40, 6  ;;  %v588_v44 = vrot.slane %v578_v40, 7  ;;  %v1274_v49 = vpack.i.bf16 %v578_v40, %v577_v34  ;;  %v731_v6 = vadd.f32 %v1112_v3, %v730_v62 }
 0x194   : > { %v1160_v63 = vpop.f32.mrf.mxu0 }
 0x195   : > { %v589_v45 = vsel %vm488_vm0, %v587_v41, %v588_v44  ;;  %v583_v47 = vsel %vm481_vm3, %v581_v42, %v582_v43  ;;  %v1304_v43 = vld [vmem:[%s1810_s9 + $0x8] ss:$0 sps:$4 sm:$0xff]   ;;  %v1114_v44 = vld [vmem:[%s1809_s8] ss:$0 sm:$0xff] }
 0x196   : > { %v1269_v48 = vpack.i.bf16 %v589_v45, %v591_v46  ;;  %v733_v1 = vpop.f32.mrf.mxu0  ;;  %v894_v45 = vsel %vm634_vm7, %v1304_v43, 0 }
 0x197   : > { %v734_v18 = vadd.f32 %v1112_v3, %v733_v1  ;;  %1171 = vmatpush3.bf16.msra.mxu0 %v894_v45 }
 0x198   : > { %1270 = vrot.lane.b32.xlu1 %v1269_v48, %s1460_s27  ;;  %v1161_v2 = vpop.f32.mrf.mxu0  ;;  %1172 = vmatprep.subr.bf16.mxu0 %v1457_v0 }
 0x19c   : > { %1275 = vrot.lane.b32.xlu1 %v1274_v49, %s1461_s21  ;;  %v1305_v49 = vld [vmem:[%s1810_s9] sm:$0xff]  }
 0x19d   : > { %1173 = vmatpush3.bf16.msra.mxu0 %v1305_v49 }
 0x20a   : > { %v1271_v50 = vpop.permute.xlu1 %1270 }
 0x20b   : > { %v1273_v51 = vunpack.i.h.bf16 %v1271_v50  ;;  %v1272_v52 = vunpack.i.l.bf16 %v1271_v50 }
 0x20d   : > { %v605_v57 = vsel %vm510_vm5, %v586_v54, %v1272_v52  ;;  %v606_v58 = vsel %vm510_vm5, %v583_v47, %v1273_v51 }
 0x20e   : > { %v1276_v53 = vpop.permute.xlu1 %1275 }
 0x20f   : > { %v1278_v55 = vunpack.i.h.bf16 %v1276_v53  ;;  %v1277_v56 = vunpack.i.l.bf16 %v1276_v53 }
 0x211   : > { %v608_v59 = vsel %vm607_vm8, %v605_v57, %v1277_v56  ;;  %v609_v60 = vsel %vm607_vm8, %v606_v58, %v1278_v55 }
 0x212   : > { %v610_v61 = vpack.c.bf16 %v609_v60, %v608_v59 }
 0x214   : > { %1153 = vmatmul.mubr.msk.bf16.vlgmr.msra.gmra.mxu1 %vm630_vm9, %v610_v61 }
 0x215   : > { %1166 = vmatprep.mubr.msk.bf16.mxu1 %vm1458_vm2, %v1457_v0  ;;  %1163 = vmatpush3.bf16.msra.mxu1 %v795_v11 }
 0x216   : > { %1164 = vmatprep.subr.bf16.mxu1 %v1457_v0 }
 0x219   : > { %1165 = vmatpush3.bf16.msra.mxu1 %v1303_v16  ;;  %v1118_v16 = vld [vmem:[#allocation2] ss:$0 sm:$0xff] }
 0x21a   : > { %1178 = vmatprep.subr.bf16.mxu1 %v1457_v0 }
 0x2d4   : > { %v672_v5 = vpop.f32.mrf.mxu1 }
 0x2d5   : > { %v673_v7 = vadd.f32 %v1108_v4, %v672_v5 }
 0x2d6   : > { %v1154_v9 = vpop.f32.mrf.mxu1 }
 0x2d7   : > { %v679_v10 = vmax.f32 %v673_v7, 0.0 }
 0x2d8   : > { %v675_v12 = vpop.f32.mrf.mxu1 }
 0x2d9   : > { %v737_v13 = vadd.f32 %v731_v6, %v679_v10  ;;  %v676_v14 = vadd.f32 %v1108_v4, %v675_v12  ;;  %v940_v12 = vld [vmem:[#allocation5] sm:$0xf] }
 0x2da   : > { %v1155_v15 = vpop.f32.mrf.mxu1 }
 0x2db   : > { %v739_v17 = vmax.f32 %v737_v13, 0.0  ;;  %v680_v19 = vmax.f32 %v676_v14, 0.0  ;;  %v950_v13 = vsel %vm634_vm7, %v940_v12, 0 }
 0x2dd   : > { %v738_v20 = vadd.f32 %v734_v18, %v680_v19  ;;  %v749_v22 = vrot.slane %v739_v17, 6  ;;  %v743_v28 = vrot.slane %v739_v17, 4 }
 0x2df   : > { %v1712_v21 = vmax.f32 %v738_v20, 0.0  ;;  %v753_v26 = vsel %vm481_vm3, 0.0, %v749_v22  ;;  %v748_v36 = vsel %vm634_vm7, 0.0, %v743_v28 }
 0x2e1   : > { %v1284_v23 = vpack.i.bf16 %v1712_v21, %v739_v17  ;;  %v750_v24 = vrot.slane %v1712_v21, 6  ;;  %v744_v29 = vrot.slane %v1712_v21, 4 }
 0x2e3   : > { %1285 = vrot.lane.b32.xlu1 %v1284_v23, %s1461_s21  ;;  %v751_v25 = vsel %vm481_vm3, %v749_v22, %v750_v24  ;;  %v745_v37 = vsel %vm634_vm7, %v743_v28, %v744_v29 }
 0x2e4   : > { %v1279_v27 = vpack.i.bf16 %v751_v25, %v753_v26 }
 0x2e6   : > { %1280 = vrot.lane.b32.xlu0 %v1279_v27, %s1460_s27  ;;  %v941_v27 = vld [vmem:[#allocation7] sm:$0x1] }
 0x355   : > { %v1286_v30 = vpop.permute.xlu1 %1285 }
 0x356   : > { %v1288_v34 = vunpack.i.h.bf16 %v1286_v30  ;;  %v1287_v35 = vunpack.i.l.bf16 %v1286_v30 }
 0x358   : > { %v1281_v31 = vpop.permute.xlu0 %1280 }
 0x359   : > { %v1283_v32 = vunpack.i.h.bf16 %v1281_v31  ;;  %v1282_v33 = vunpack.i.l.bf16 %v1281_v31 }
 0x35b   : > { %v767_v38 = vsel %vm510_vm5, %v748_v36, %v1282_v33  ;;  %v768_v39 = vsel %vm510_vm5, %v745_v37, %v1283_v32 }
 0x35c   : > { %v769_v40 = vsel %vm607_vm8, %v767_v38, %v1287_v35  ;;  %v770_v41 = vsel %vm607_vm8, %v768_v39, %v1288_v34 }
 0x35d   : > { %v771_v42 = vpack.c.bf16 %v770_v41, %v769_v40 }
 0x35f   : > { %1167 = vmatmul.mubr.msk.bf16.vlgmr.msra.gmra.mxu1 %vm630_vm9, %v771_v42 }
 0x360   : > { %1180 = vmatprep.mubr.msk.bf16.mxu1 %vm1458_vm2, %v1457_v0  ;;  %1179 = vmatpush3.bf16.msra.mxu1 %v950_v13 }
 0x41f   : > { %v831_v46 = vpop.f32.mrf.mxu1 }
 0x420   : > { %v832_v47 = vadd.f32 %v1114_v44, %v831_v46 }
 0x421   : > { %v1168_v48 = vpop.f32.mrf.mxu1 }
 0x422   : > { %v838_v50 = vmax.f32 %v832_v47, 0.0 }
 0x423   : > { %v834_v51 = vpop.f32.mrf.mxu1 }
 0x424   : > { %v835_v52 = vadd.f32 %v1114_v44, %v834_v51  ;;  %v848_v54 = vrot.slane %v838_v50, 6  ;;  %v842_v56 = vrot.slane %v838_v50, 4 }
 0x425   : > { %v1169_v53 = vpop.f32.mrf.mxu1 }
 0x426   : > { %v839_v55 = vmax.f32 %v835_v52, 0.0  ;;  %v852_v60 = vsel %vm481_vm3, 0.0, %v848_v54  ;;  %v847_v6 = vsel %vm634_vm7, 0.0, %v842_v56 }
 0x428   : > { %v843_v57 = vrot.slane %v839_v55, 4  ;;  %v849_v58 = vrot.slane %v839_v55, 6  ;;  %v1294_v59 = vpack.i.bf16 %v839_v55, %v838_v50 }
 0x42a   : > { %1295 = vrot.lane.b32.xlu1 %v1294_v59, %s1461_s21  ;;  %v850_v0 = vsel %vm481_vm3, %v848_v54, %v849_v58  ;;  %v844_v61 = vsel %vm634_vm7, %v842_v56, %v843_v57  ;;  %s1123_s21 = sshll.u32 %s1554_s29, 4 }
 0x42b   : > { %v1289_v62 = vpack.i.bf16 %v850_v0, %v852_v60  ;;  %s1760_s17 = scalar_lea.hbm %s1814_s13, %s1123_s21 }
 0x42d   : > { %1290 = vrot.lane.b32.xlu0 %v1289_v62, %s1460_s27  ;;  %s469_s27 = sand.u32 1, %s1444_s26  }
 0x42e   : > { %s470_s16 = scalar_lea.vmem [#allocation8], %s469_s27  ;;  %s995_s14 = scalar_lea.sflag [#allocation4], %s469_s27 }
 0x42f   : > { %s1007_s20 = sshll.u32 %s470_s16, 4  ;;  %s1762_s20 = int_to_ptr.vmem [resolvable:$true] %s1007_s20 }
 0x430   : > { %s1384_s29 = scalar_lea.vmem %s1762_s20, 16  ;;  %p1391_p4 = scmp.lt.s32.totalorder %s1762_s20, %s1389_s24 }
 0x431   : > { %p1385_p10 = scmp.ne.s32.totalorder %s1762_s20, %s1384_s29  ;;  %p1392_p5 = scmp.lt.s32.totalorder %s1390_s30, %s1384_s29 }
 0x433   : > { %p1386_p2 = pnand %p1385_p10, %p1831_p12  ;;  %p1393_p6 = por %p1392_p5, %p1391_p4 }
 0x435   : > { %p1387_p9 = pneg %p1386_p2 }
 0x437   : > { %p1394_p7 = pnand %p1393_p6, %p1387_p9 }
 0x49c   : > { %v1296_v63 = vpop.permute.xlu1 %1295 }
 0x49d   : > { %v1298_v4 = vunpack.i.h.bf16 %v1296_v63  ;;  %v1297_v5 = vunpack.i.l.bf16 %v1296_v63 }
 0x49f   : > { %v1291_v1 = vpop.permute.xlu0 %1290 }
 0x4a0   : > { %v1293_v2 = vunpack.i.h.bf16 %v1291_v1  ;;  %v1292_v3 = vunpack.i.l.bf16 %v1291_v1 }
 0x4a2   : > { %v866_v7 = vsel %vm510_vm5, %v847_v6, %v1292_v3  ;;  %v867_v8 = vsel %vm510_vm5, %v844_v61, %v1293_v2 }
 0x4a3   : > { %v868_v9 = vsel %vm607_vm8, %v866_v7, %v1297_v5  ;;  %v869_v10 = vsel %vm607_vm8, %v867_v8, %v1298_v4 }
 0x4a4   : > { %v870_v11 = vpack.c.bf16 %v869_v10, %v868_v9 }
 0x4a6   : > { %1175 = vmatmul.mubr.msk.bf16.vlgmr.msra.gmra.mxu0 %vm630_vm9, %v870_v11 }
 0x566   : > { %v930_v14 = vpop.f32.mrf.mxu0 }
 0x568   : > { %v1176_v15 = vpop.f32.mrf.mxu0 }
 0x56a   : > { %v932_v17 = vpop.f32.mrf.mxu0 }
 0x56b   : > { %v933_v18 = vadd.f32 %v1118_v16, %v932_v17 }
 0x56c   : > { %v1177_v19 = vpop.f32.mrf.mxu0 }
 0x56d   : > { %v936_v20 = vmax.f32 %v933_v18, 0.0 }
 0x56f   : > { %v937_v22 = vadd.f32 %v936_v20, %v1712_v21 }
 0x571   : > { %v938_v23 = vmax.f32 %v937_v22, 0.0 }
 0x573   : > { %v939_v24 = vpack.c.bf16 %v938_v23, %v938_v23 }
 0x575   : > { %v943_v25 = vshrl.u32 %v939_v24, 16 }
 0x577   : > { %v945_v26 = vrot.slane %v943_v25, 3 }
 0x579   : > { %1181 = vmatmul.mubr.msk.bf16.vlgmr.msra.gmra.mxu1 %vm510_vm5, %v945_v26 }
 0x639   : > { %v986_v28 = vpop.f32.mrf.mxu1 }
 0x63a   : > { %v987_v29 = vadd.f32 %v986_v28, %v941_v27 }
 0x63b   : > { %v1182_v21 = vpop.f32.mrf.mxu1 }
 0x63c   : > { %993 = vst.msk [vmem:[%s470_s16] sm:$0x1] %vm992_vm10, %v987_v29 }
 0x63d   : > { %v989_v30 = vpop.f32.mrf.mxu1 }
 0x63e   : > { %1397 = shalt.err (!%p1394_p7)
}
 0x63f   : > { %s1398_s21 = scalar_lea.hbm %s1760_s17, 16  ;;  %s1402_s23 = scalar_lea.hbm %s1814_s13, 32 }
 0x640   : > { %p1399_p8 = scmp.ne.s32.totalorder %s1760_s17, %s1398_s21  ;;  %p1403_p0 = scmp.lt.s32.totalorder %s1760_s17, %s1814_s13 }
 0x641   : > { %p1404_p1 = scmp.lt.s32.totalorder %s1402_s23, %s1398_s21 }
 0x642   : > { %p1400_p13 = pnand %p1399_p8, %p1831_p12 }
 0x643   : > { %p1405_p3 = por %p1404_p1, %p1403_p0 }
 0x644   : > { %p1401_p11 = pneg %p1400_p13 }
 0x646   : > { %p1406_p10 = pnand %p1405_p3, %p1401_p11 }
 0x648   : > { %1409 = shalt.err (!%p1406_p10)
}
 0x649   : > { %1196 = dma.vmem_to_hbm [thread:$0]  (%p1831_p12), %s1762_s20, 16, %s1760_s17, %s995_s14   ;;  %v1183_v31 = vpop.f32.mrf.mxu1 }
 0x64a PF: > { %p1218_p2 = scmp.ge.s32.totalorder %s1452_s28, 2  ;;  %s1019_s29 = sand.u32 1, %s1440_s25  }
 0x64b   : > { %p1832_p9 = scmp.ne.s32.totalorder %s1824_s19, 0  ;;  %s1020_s24 = scalar_lea.sflag [#allocation4], %s1019_s29 }
 0x64d   : > { %p1209_p4 = pnand %p1218_p2, %p1832_p9 }
 0x64f   : > { %p1210_p5 = pneg %p1209_p4 }
 0x651   : > { %1435 = dma.done.wait (%p1210_p5), %s1020_s24, 16  }
 0x652   : > { %1437 = vsyncadd (%p1210_p5), %s1020_s24, 4294967280  ;;  %s1833_s28 = sld [smem:[#allocation13_spill]]  ;;  %s1836_s25 = smov %s1444_s26 }
 0x653   : > { %s1834_s30 = sld [smem:[#allocation12_spill]] }
 0x654   : > { %s1835_s27 = sld [smem:[#allocation14_spill]] }
 0x658   : > { %p25_p6 = scmp.ge.s32.totalorder %s1833_s28, 4  }
 0x659   : > { %s1837_s26 = smov %s1834_s30 }
 0x65a   :  { %27 = sbr.rel (!%p25_p6) target bundleno = 5 (0x5), region = 120 }
 0x65f   :  { %1024 = vsyncpa [#allocation3], 1 }
 0x660   :  { %1026 = vsyncpa [#allocation3 + $0x1], 1 }
 0x661   :  { %1027 = vsyncpa [#allocation6], 1 }
 0x662   :  { %1028 = vsyncpa [#allocation4], 1 }
 0x663   :  { %1030 = vsyncpa [#allocation4 + $0x1], 1 }

</bundles_post_ra>
